<compile_context>
chip_gen: v7x
topology: tpu7x:2x2x1
jax: 0.10.0
libtpu: 0.0.40
codegen_flags: <defaults>
</compile_context>

<pallas_src>
import functools

import jax
import jax.numpy as jnp
from jax.experimental import pallas as pl
from jax.experimental.pallas import tpu as pltpu

_LANES = 1024                 # lane-dense slab width (multiple of 128 -> unmasked full-width stores)
_PREFERRED_BLOCK_ROWS = 2048  # 2 MiB uint8 block; 2 in-bufs + 2 out-bufs = 8 MiB VMEM


def _posterize_kernel(x_ref, mask_ref, o_ref):
    # Packed uint8 bitwise AND with a runtime scalar mask (0xF0 when the
    # transform fires, 0xFF for identity).  Data stays in packed (32,128)
    # uint8 vregs: no int32 widening, no per-element select.
    m = mask_ref[0, 0].astype(jnp.uint8)
    o_ref[...] = x_ref[...] & m


def _pick_block_rows(rows: int) -> int:
    """Largest block that keeps >=~8 grid steps (v7x megacore), capped at ~2 MiB."""
    if rows <= 8 * 32:
        return rows                              # single block == full array (layout-exempt)
    target = pl.cdiv(rows, 8)                    # aim for at least 8 grid steps
    target = ((target + 31) // 32) * 32          # multiple of 32 for uint8 (32,128) tiling
    return min(_PREFERRED_BLOCK_ROWS, target)


def _posterize_slab(x2, mask_arr):
    """Apply the dynamic byte mask to a (rows, 1024) uint8 slab via Pallas."""
    rows, lanes = x2.shape
    block_rows = _pick_block_rows(rows)
    num_blocks = pl.cdiv(rows, block_rows)       # ragged last block is masked by Pallas
    return pl.pallas_call(
        _posterize_kernel,
        out_shape=jax.ShapeDtypeStruct(x2.shape, jnp.uint8),
        grid=(num_blocks,),
        in_specs=[
            pl.BlockSpec((block_rows, lanes), lambda i: (i, 0)),
            pl.BlockSpec(memory_space=pltpu.MemorySpace.SMEM),   # (1,1) scalar mask
        ],
        out_specs=pl.BlockSpec((block_rows, lanes), lambda i: (i, 0)),
        input_output_aliases={0: 0},             # in-place-safe elementwise op
        compiler_params=pltpu.CompilerParams(dimension_semantics=("parallel",)),
        cost_estimate=pl.CostEstimate(
            flops=0, transcendentals=0, bytes_accessed=2 * rows * lanes),
    )(x2, mask_arr)


def random_posterize(img, key, *, bits: int = 4, p: float = 0.5):
    """JAX/Pallas equivalent of RandomPosterize.forward.

    img: uint8 array (N, C, H, W)
    key: PRNG key for the Bernoulli(p) "apply" decision
         (replaces python `random.random() < p`).
    Returns (output image, apply_flag).
    """
    assert img.dtype == jnp.uint8
    shift = 8 - bits
    bits_mask = (0xFF >> shift) << shift          # bits=4 -> 0xF0

    apply_flag = jax.random.uniform(key) < p
    # Fold the random decision into the mask: identity (0xFF) when not applied.
    mask_val = jnp.where(apply_flag, jnp.int32(bits_mask), jnp.int32(0xFF))
    mask_arr = mask_val.reshape(1, 1)             # SMEM (1,1) scalar

    shape = img.shape
    flat = img.reshape(-1)
    total = flat.size

    rows = total // _LANES
    body = rows * _LANES
    tail = total - body                           # < 1024 elems; 0 for common image shapes

    pieces = []
    if rows > 0:
        x2 = (flat if tail == 0 else flat[:body]).reshape(rows, _LANES)
        pieces.append(_posterize_slab(x2, mask_arr).reshape(-1))
    if tail > 0:
        # Tiny ragged tail handled with one jnp op instead of padding the whole array.
        pieces.append(flat[body:] & mask_val.astype(jnp.uint8))
    out = pieces[0] if len(pieces) == 1 else jnp.concatenate(pieces)
    return out.reshape(shape), apply_flag


if __name__ == "__main__":
    key = jax.random.PRNGKey(0)
    k_img, k_p = jax.random.split(key)

    # small deterministic example: batch=2, channels=4, spatial=16x16
    # (2*4*16*16 = 2048 elements -> two full 1024-lane rows, no tail)
    img = jax.random.randint(
        k_img, (2, 4, 16, 16), minval=0, maxval=256, dtype=jnp.int32
    ).astype(jnp.uint8)

    # plain-JAX reference (compute before calling the donating jits)
    mask_u8 = jnp.uint8((0xFF >> 4) << 4)         # 0xF0
    post_ref = jnp.bitwise_and(img, mask_u8)

    # Donate the image so the aliased pallas_call can update it in place.
    fn_always = jax.jit(functools.partial(random_posterize, bits=4, p=1.0),
                        donate_argnums=0)
    fn_rand = jax.jit(functools.partial(random_posterize, bits=4, p=0.5),
                      donate_argnums=0)

    # p=1.0 forces the posterize mask so the result is deterministic.
    out_always, flag_always = fn_always(jnp.copy(img), k_p)
    out_always = jax.block_until_ready(out_always)

    # p=0.5 exercises the module's actual stochastic semantics (kernel always runs).
    out_rand, flag_rand = fn_rand(jnp.copy(img), k_p)
    out_rand = jax.block_until_ready(out_rand)

    assert out_always.shape == img.shape and out_always.dtype == jnp.uint8
    assert bool(jnp.all(out_always == post_ref))

    ref_rand = jnp.where(flag_rand, post_ref, img)
    assert out_rand.shape == img.shape and out_rand.dtype == jnp.uint8
    assert bool(jnp.all(out_rand == ref_rand))

    print("KERNEL_OK")
</pallas_src>

<mosaic_0001>
module attributes {stable_mosaic.version = 11 : i64} {
  func.func @_posterize_kernel(%arg0: i32, %arg1: memref<2x1024xi8, #tpu.memory_space<vmem>>, %arg2: memref<1x1xi32, #tpu.memory_space<smem>>, %arg3: memref<2x1024xi8, #tpu.memory_space<vmem>>) attributes {dimension_semantics = [#tpu.dimension_semantics<parallel>], iteration_bounds = array<i64: 1>, scalar_prefetch = 0 : i64, scratch_operands = 0 : i64, tpu.core_type = #tpu.core_type<tc>, window_params = [{transform_indices = @transform_0, window_bounds = array<i64: 2, 1024>}, {transform_indices = @transform_1, window_bounds = array<i64: 1, 1>}, {transform_indices = @transform_2, window_bounds = array<i64: 2, 1024>}]} {
    %c0 = arith.constant 0 : index
    %c0_0 = arith.constant 0 : index
    %0 = memref.load %arg2[%c0, %c0_0] : memref<1x1xi32, #tpu.memory_space<smem>>
    %1 = arith.trunci %0 : i32 to i8
    %c0_1 = arith.constant 0 : index
    %c0_2 = arith.constant 0 : index
    %2 = vector.load %arg1[%c0_1, %c0_2] : memref<2x1024xi8, #tpu.memory_space<vmem>>, vector<2x1024xi8>
    %3 = vector.broadcast %1 : i8 to vector<2x1024xi8>
    %4 = arith.andi %2, %3 : vector<2x1024xi8>
    %c0_3 = arith.constant 0 : index
    %c0_4 = arith.constant 0 : index
    %5 = vector.load %arg3[%c0_3, %c0_4] : memref<2x1024xi8, #tpu.memory_space<vmem>>, vector<2x1024xi8>
    tpu.vector_store %arg3[%c0_3, %c0_4], %4 {strides = array<i32>} : memref<2x1024xi8, #tpu.memory_space<vmem>>, vector<2x1024xi8>,
    return
  }
  func.func @transform_0(%arg0: i32) -> (i32, i32) {
    %c0_i32 = arith.constant 0 : i32
    %c0_i32_0 = arith.constant 0 : i32
    return %arg0, %c0_i32 : i32, i32
  }
  func.func @transform_1(%arg0: i32) -> (i32, i32) {
    %c0_i32 = arith.constant 0 : i32
    %c0_i32_0 = arith.constant 0 : i32
    %c0_i32_1 = arith.constant 0 : i32
    return %c0_i32, %c0_i32_0 : i32, i32
  }
  func.func @transform_2(%arg0: i32) -> (i32, i32) {
    %c0_i32 = arith.constant 0 : i32
    %c0_i32_0 = arith.constant 0 : i32
    return %arg0, %c0_i32 : i32, i32
  }
}

</mosaic_0001>

<bundles_post_ra>
// kernel: random_posterize.1
= control target key start
LH: loop header
LB: loop body
LE: loop exit
PB: predicated region body
PF: predicated region fallthrough
CT: control target
= control target key end

     0   :  { %vm24_vm0 = vcmask 1040384   ;;  %vm25_vm1 = vsmask.f32 256  ;;  %vm27_vm2 = vcmask 1041409   ;;  %vm28_vm3 = vsmask.f32 1280  ;;  %s89_s1 = inlined_call_operand.<no memory space> [shape: s32[1,1], index: 1, kind: input, shape index: {}]   ;;  %s90_s0 = inlined_call_operand.vmem [shape: u8[2,1024], index: 0, kind: input, shape index: {}, may-alias: {0,2}]   ;;  %s91_s2 = inlined_call_operand.vmem [shape: u8[2,1024], index: 2, kind: output, shape index: {}, may-alias: {0,2}]  }
   0x1   :  { %s13_s11 = sand.u32 255, %s89_s1  ;;  %vm26_vm4 = vmand %vm24_vm0, %vm25_vm1  ;;  %vm31_vm5 = vcmask 1042434   ;;  %vm32_vm6 = vsmask.f32 2304  ;;  %vm35_vm9 = vcmask 1043459   ;;  %vm39_vm13 = vcmask 1044484  }
   0x2   :  { %s15_s12 = sshll.u32 %s13_s11, 8  ;;  %vm29_vm7 = vmand %vm27_vm2, %vm28_vm3  ;;  %vm36_vm10 = vsmask.f32 3328  ;;  %vm40_vm14 = vsmask.f32 4352  ;;  %vm43_vm1 = vcmask 1045509  }
   0x3   :  { %s16_s13 = sor.u32 %s15_s12, %s13_s11  ;;  %vm30_vm8 = vmor %vm29_vm7, %vm26_vm4  ;;  %vm44_vm2 = vsmask.f32 5376  ;;  %v14_v0 = vld [vmem:[%s90_s0] sm:$0xff]  ;;  %vm47_vm7 = vcmask 1046534  }
   0x4   :  { %s17_s14 = sshll.u32 %s16_s13, 16  ;;  %vm33_vm11 = vmand %vm31_vm5, %vm32_vm6  ;;  %vm48_vm5 = vsmask.f32 6400  ;;  %v55_v3 = vld [vmem:[%s91_s2] sm:$0xff] }
   0x5   :  { %s18_s15 = sor.u32 %s17_s14, %s16_s13  ;;  %vm34_vm12 = vmor %vm33_vm11, %vm30_vm8  ;;  %vm51_vm11 = vcmask 1047559  }
   0x6   :  { %s19_s16 = sshll.u32 %s18_s15, 24  ;;  %vm37_vm15 = vmand %vm35_vm9, %vm36_vm10  ;;  %vm52_vm9 = vsmask.f32 7424 }
   0x7   :  { %s20_s17 = sor.u32 %s19_s16, %s18_s15  ;;  %vm38_vm0 = vmor %vm37_vm15, %vm34_vm12 }
   0x8   :  { %vm41_vm3 = vmand %vm39_vm13, %vm40_vm14  ;;  %v21_v1 = vstv %s20_s17 }
   0x9   :  { %vm42_vm4 = vmor %vm41_vm3, %vm38_vm0  ;;  %v23_v2 = vand.u32 %v21_v1, %v14_v0 }
   0xa   :  { %vm45_vm6 = vmand %vm43_vm1, %vm44_vm2 }
   0xb   :  { %vm46_vm8 = vmor %vm45_vm6, %vm42_vm4 }
   0xc   :  { %vm49_vm10 = vmand %vm47_vm7, %vm48_vm5 }
   0xd   :  { %vm50_vm12 = vmor %vm49_vm10, %vm46_vm8 }
   0xe   :  { %vm53_vm13 = vmand %vm51_vm11, %vm52_vm9 }
   0xf   :  { %vm54_vm14 = vmor %vm53_vm13, %vm50_vm12 }
  0x10   :  { %v56_v4 = vsel %vm54_vm14, %v23_v2, %v55_v3 }
  0x11   :  { %57 = vst [vmem:[%s91_s2] sm:$0xff] %v56_v4 }

</bundles_post_ra>
